<compile_context>
chip_gen: v5e
topology: v5e:2x2
jax: 0.10.0
libtpu: 0.0.40
codegen_flags: <defaults>
</compile_context>

<pallas_src>
import functools

import jax
import jax.numpy as jnp
from jax.experimental import pallas as pl
from jax.experimental.pallas import tpu as pltpu

BN_EPS = 1e-5


def _round_up(v, m):
    return ((v + m - 1) // m) * m


def _vmem_capacity_bytes():
    try:
        info = pltpu.get_tpu_info()
        for attr in ("vmem_capacity_bytes", "vmem_size_bytes", "vmem_bytes"):
            v = getattr(info, attr, None)
            if v:
                return int(v)
    except Exception:
        pass
    return 64 << 20  # conservative: v7x physical VMEM per TensorCore


_VMEM_CAPACITY = _vmem_capacity_bytes()
# 25% headroom for compiler-internal scratch: ~48 MiB on v7x, ~96 MiB on v5e/v6e.
_VMEM_BUDGET = int(_VMEM_CAPACITY * 3 // 4)


# --------------------------------------------------------------------------------------
# Kernel
# --------------------------------------------------------------------------------------
def _make_kernel(hidden_dims):
    """Kernel ref layout:
       x_ref                       : (TB, L, C)        (bf16 or f32)
       refs[0 .. n-1]              : folded Linear weights W_i  (in_i, out_i)
       refs[n]                     : folded head weight as a row (1, H_last), f32
       refs[n+1]                   : concatenated folded biases, 128-lane padded, f32
       refs[n+2]                   : output (TB, 1), f32
    """
    n = len(hidden_dims)
    offs, o = [], 0
    for hd in hidden_dims:
        offs.append(o)
        o += _round_up(hd, 128)         # each bias segment starts lane-aligned
    head_off = o                        # head bias lives at [head_off : head_off+1]

    def kernel(x_ref, *refs):
        w_refs = refs[:n]
        wh_ref = refs[n]
        b_ref = refs[n + 1]
        out_ref = refs[n + 2]

        # AdaptiveAvgPool1d(1) after the transpose == mean over L; the 1/L scale is
        # folded into W_1, so a plain sum suffices here.
        h = jnp.sum(x_ref[...].astype(jnp.float32), axis=1)           # (TB, C), f32

        for i in range(n):
            w = w_refs[i][...]
            # MXU matmul; operands may be bf16, accumulation is f32.
            z = jnp.dot(h.astype(w.dtype), w, preferred_element_type=jnp.float32)
            z = z + b_ref[:, offs[i]:offs[i] + hidden_dims[i]]
            # ReLU. Dropout(0.3) is identity in eval; eval-mode BatchNorm1d is folded
            # into the next layer's W/b, so nothing else to do here.
            h = jnp.maximum(z, 0.0)

        # Head (out_features == 1): VPU multiply + lane reduction instead of an N=1
        # MXU matmul (which would light up 1 of 128/256 MXU columns).
        logits = jnp.sum(h * wh_ref[...], axis=-1, keepdims=True)      # (TB, 1)
        logits = logits + b_ref[:, head_off:head_off + 1]
        out_ref[...] = jax.nn.sigmoid(logits).astype(out_ref.dtype)

    return kernel


# --------------------------------------------------------------------------------------
# Parameter construction / eval-mode BN folding (done once, outside the jitted forward)
# --------------------------------------------------------------------------------------
def init_params(key, input_dim, hidden_dims):
    """Per hidden layer: [W (in,out), b (1,out), gamma, beta, run_mean, run_var],
    then [W_head (H_last, 1), b_head (1, 1)]. BN stats are randomized so the fold is
    actually exercised (still exactly eval-mode semantics)."""
    params = []
    prev = input_dim
    for h in hidden_dims:
        key, kw, kb, kg, kbe, km, kv = jax.random.split(key, 7)
        bound = prev ** -0.5
        params.extend([
            jax.random.uniform(kw, (prev, h), jnp.float32, -bound, bound),
            jax.random.uniform(kb, (1, h), jnp.float32, -bound, bound),
            jax.random.uniform(kg, (1, h), jnp.float32, 0.8, 1.2),       # gamma
            0.1 * jax.random.normal(kbe, (1, h), jnp.float32),           # beta
            0.1 * jax.random.normal(km, (1, h), jnp.float32),            # running_mean
            jax.random.uniform(kv, (1, h), jnp.float32, 0.5, 1.5),       # running_var
        ])
        prev = h
    key, kw, kb = jax.random.split(key, 3)
    bound = prev ** -0.5
    params.extend([
        jax.random.uniform(kw, (prev, 1), jnp.float32, -bound, bound),
        jax.random.uniform(kb, (1, 1), jnp.float32, -bound, bound),
    ])
    return params


def fold_params(raw_params, hidden_dims, seq_len, eps=BN_EPS):
    """Fold (a) the 1/L mean-pool scale into the first Linear weight and (b) eval-mode
    BatchNorm of layer i (scale/shift from running stats) into the Linear of layer i+1
    (and the head). Returns:
      ws          : tuple of folded weights, (in_i, out_i), f32
      w_head_row  : folded head weight as a (1, H_last) row, f32
      b_concat    : folded biases concatenated with each segment padded to a multiple
                    of 128 lanes (head slot padded to 128), (1, sum(pad128(H))+128)
    """
    n = len(hidden_dims)
    ws, bs = [], []
    scale_prev = shift_prev = None
    idx = 0
    for layer in range(n):
        W, b, g, be, rm, rv = raw_params[idx:idx + 6]
        idx += 6
        if scale_prev is None:
            Wf, bf = W / float(seq_len), b          # fold 1/L of the mean pool into W_1
        else:
            Wf = scale_prev.reshape(-1, 1) * W
            bf = b + shift_prev @ W
        ws.append(Wf.astype(jnp.float32))
        bs.append(bf.astype(jnp.float32))
        scale_prev = (g * jax.lax.rsqrt(rv + eps)).reshape(1, -1)
        shift_prev = (be - rm * scale_prev).reshape(1, -1)
    Wh, bh = raw_params[idx], raw_params[idx + 1]
    Whf = scale_prev.reshape(-1, 1) * Wh            # (H_last, 1)
    bhf = bh + shift_prev @ Wh                      # (1, 1)
    w_head_row = Whf.reshape(1, -1).astype(jnp.float32)

    padded = []
    for bf, hd in zip(bs, hidden_dims):
        pw = _round_up(hd, 128)
        padded.append(jnp.pad(bf, ((0, 0), (0, pw - hd))))
    padded.append(jnp.pad(bhf.astype(jnp.float32), ((0, 0), (0, 127))))
    b_concat = jnp.concatenate(padded, axis=1).astype(jnp.float32)
    return tuple(ws), w_head_row, b_concat


# --------------------------------------------------------------------------------------
# Wrapper
# --------------------------------------------------------------------------------------
@functools.partial(jax.jit, static_argnames=("compute_dtype",))
def fc_classifier_forward(x, ws, w_head_row, b_concat, *, compute_dtype=jnp.bfloat16):
    B, L, C = x.shape
    hidden = tuple(int(w.shape[1]) for w in ws)
    n = len(hidden)
    h_last = hidden[-1]
    total_b = sum(_round_up(h, 128) for h in hidden) + 128
    assert w_head_row.shape == (1, h_last)
    assert b_concat.shape == (1, total_b)

    # bf16 MXU operands by default (the kernel is HBM-bound on x for realistic L and
    # f32 MXU operands run at a fraction of bf16 rate); f32 accumulation + epilogue.
    x = x.astype(compute_dtype)
    ws = tuple(w.astype(compute_dtype) for w in ws)
    w_head_row = w_head_row.astype(jnp.float32)
    b_concat = b_concat.astype(jnp.float32)

    itemsize = jnp.dtype(compute_dtype).itemsize
    max_dim = max(hidden + (C,))
    param_bytes = sum(w.size * itemsize for w in ws) + (h_last + total_b) * 4

    # ---- derive TB from the per-generation VMEM budget and L*C -----------------------
    # per-row: double-buffered x block + f32 activation/staging chain + output.
    per_row = 2 * L * C * itemsize + 4 * 4 * max_dim + 2 * 4
    avail = _VMEM_BUDGET - 2 * param_bytes - (4 << 20)     # params double-buffered + slack
    tb_vmem = max(avail // per_row, 8)
    tb_vmem = max((tb_vmem // 8) * 8, 8)

    # ---- guarantee >=2 (>=4 at larger B) batch tiles so "parallel" spans both v7x TCs
    if B >= 64:
        min_tiles = 4
    elif B >= 16:
        min_tiles = 2
    else:
        min_tiles = 1
    tb_split = _round_up(pl.cdiv(B, min_tiles), 8)

    TB = int(min(tb_vmem, tb_split))
    if TB >= B:
        TB = B
    grid = (pl.cdiv(B, TB),)

    kernel = _make_kernel(hidden)

    in_specs = [pl.BlockSpec((TB, L, C), lambda i: (i, 0, 0))]
    for w in ws:  # weights: full array, constant block index -> stay VMEM-resident
        in_specs.append(pl.BlockSpec(w.shape, lambda i: (0, 0)))
    in_specs.append(pl.BlockSpec((1, h_last), lambda i: (0, 0)))
    in_specs.append(pl.BlockSpec((1, total_b), lambda i: (0, 0)))
    out_spec = pl.BlockSpec((TB, 1), lambda i: (i, 0))

    # Advisory cost estimate for XLA's outer scheduler.
    flops = 2 * B * L * C  # pool
    dims = (C,) + hidden
    for a, b in zip(dims[:-1], dims[1:]):
        flops += 2 * B * a * b
    flops += 2 * B * h_last  # VPU head
    bytes_accessed = (x.size * itemsize
                      + sum(w.size * itemsize for w in ws)
                      + (h_last + total_b) * 4 + B * 4)
    cost = pl.CostEstimate(flops=int(flops), transcendentals=int(B),
                           bytes_accessed=int(bytes_accessed))

    # VMEM limit: double-buffered x + double-buffered params + f32 activation/staging
    # chain + output + slack, capped at 75% of physical VMEM (48 MiB v7x, 96 MiB v6e/v5e).
    need = (2 * TB * L * C * itemsize
            + 2 * param_bytes
            + 4 * TB * max_dim * 4
            + 2 * TB * 4
            + (4 << 20))
    vmem_limit = int(min(max(need, 16 << 20), _VMEM_BUDGET))

    return pl.pallas_call(
        kernel,
        out_shape=jax.ShapeDtypeStruct((B, 1), jnp.float32),
        grid=grid,
        in_specs=in_specs,
        out_specs=out_spec,
        compiler_params=pltpu.CompilerParams(
            dimension_semantics=("parallel",),  # shards batch tiles across v7x's 2 TCs
            vmem_limit_bytes=vmem_limit),
        cost_estimate=cost,
    )(x, *ws, w_head_row, b_concat)


# --------------------------------------------------------------------------------------
# Pure-JAX reference (unfolded, exactly the module's eval-mode math)
# --------------------------------------------------------------------------------------
def reference_forward(x, raw_params, num_hidden_layers):
    h = jnp.mean(x, axis=1)
    idx = 0
    for _ in range(num_hidden_layers):
        w, b, g, be, rm, rv = raw_params[idx:idx + 6]
        idx += 6
        h = jnp.maximum(h @ w + b, 0.0)                    # Linear -> ReLU (Dropout=id)
        h = (h - rm) / jnp.sqrt(rv + BN_EPS) * g + be      # BatchNorm1d (eval)
    w, b = raw_params[idx], raw_params[idx + 1]
    return jax.nn.sigmoid(h @ w + b)


if __name__ == "__main__":
    hidden_dims = (512, 256, 128)  # module defaults
    key = jax.random.PRNGKey(0)

    # ---- case 1: tiny batch (module-consistent shapes), strict f32 check -------------
    B, L, C = 2, 8, 32
    key, kx, kp = jax.random.split(key, 3)
    x = jax.random.normal(kx, (B, L, C), jnp.float32)
    raw_params = init_params(kp, C, hidden_dims)

    # Fold the 1/L pool scale + eval-mode BN into the Linears once, outside the jit.
    ws, w_head_row, b_concat = fold_params(raw_params, hidden_dims, L)
    ref = reference_forward(x, raw_params, len(hidden_dims))

    out_f32 = fc_classifier_forward(x, ws, w_head_row, b_concat,
                                    compute_dtype=jnp.float32)
    out_f32 = jax.block_until_ready(out_f32)
    assert out_f32.shape == (B, 1), out_f32.shape
    assert bool(jnp.all(jnp.isfinite(out_f32)))
    assert bool(jnp.allclose(out_f32, ref, atol=1e-4, rtol=1e-4)), (out_f32, ref)

    # Default bf16 path (MXU operands bf16, f32 accumulate/epilogue); loose tolerance.
    out_bf16 = fc_classifier_forward(x.astype(jnp.bfloat16), ws, w_head_row, b_concat)
    out_bf16 = jax.block_until_ready(out_bf16)
    assert out_bf16.shape == (B, 1)
    assert bool(jnp.all(jnp.isfinite(out_bf16)))
    assert bool(jnp.allclose(out_bf16, ref, atol=2e-2)), (out_bf16, ref)

    # ---- case 2: multi-tile grid (>=4 tiles) + ragged final batch tile ----------------
    B2 = 100
    key, kx2 = jax.random.split(key)
    x2 = jax.random.normal(kx2, (B2, L, C), jnp.float32)
    ref2 = reference_forward(x2, raw_params, len(hidden_dims))
    out2 = fc_classifier_forward(x2.astype(jnp.bfloat16), ws, w_head_row, b_concat)
    out2 = jax.block_until_ready(out2)
    assert out2.shape == (B2, 1)
    assert bool(jnp.all(jnp.isfinite(out2)))
    assert bool(jnp.allclose(out2, ref2, atol=2e-2)), (out2, ref2)

    print("KERNEL_OK")
</pallas_src>

<mosaic_0001>
module attributes {stable_mosaic.version = 11 : i64} {
  func.func @kernel(%arg0: i32, %arg1: memref<2x8x32xf32, #tpu.memory_space<vmem>>, %arg2: memref<32x512xf32, #tpu.memory_space<vmem>>, %arg3: memref<512x256xf32, #tpu.memory_space<vmem>>, %arg4: memref<256x128xf32, #tpu.memory_space<vmem>>, %arg5: memref<1x128xf32, #tpu.memory_space<vmem>>, %arg6: memref<1x1024xf32, #tpu.memory_space<vmem>>, %arg7: memref<2x1xf32, #tpu.memory_space<vmem>>) attributes {dimension_semantics = [#tpu.dimension_semantics<parallel>], iteration_bounds = array<i64: 1>, scalar_prefetch = 0 : i64, scratch_operands = 0 : i64, tpu.core_type = #tpu.core_type<tc>, window_params = [{transform_indices = @transform_0, window_bounds = array<i64: 2, 8, 32>}, {pipeline_mode = #tpu.pipeline_mode<synchronous>, transform_indices = @transform_1, window_bounds = array<i64: 32, 512>}, {pipeline_mode = #tpu.pipeline_mode<synchronous>, transform_indices = @transform_2, window_bounds = array<i64: 512, 256>}, {pipeline_mode = #tpu.pipeline_mode<synchronous>, transform_indices = @transform_3, window_bounds = array<i64: 256, 128>}, {pipeline_mode = #tpu.pipeline_mode<synchronous>, transform_indices = @transform_4, window_bounds = array<i64: 1, 128>}, {pipeline_mode = #tpu.pipeline_mode<synchronous>, transform_indices = @transform_5, window_bounds = array<i64: 1, 1024>}, {transform_indices = @transform_6, window_bounds = array<i64: 2, 1>}]} {
    %c0 = arith.constant 0 : index
    %c0_0 = arith.constant 0 : index
    %c0_1 = arith.constant 0 : index
    %0 = vector.load %arg1[%c0, %c0_0, %c0_1] : memref<2x8x32xf32, #tpu.memory_space<vmem>>, vector<2x8x32xf32>
    %cst = arith.constant dense<0.000000e+00> : vector<2x32xf32>
    %1 = vector.multi_reduction <add>, %0, %cst [1] : vector<2x8x32xf32> to vector<2x32xf32>
    %c0_2 = arith.constant 0 : index
    %c0_3 = arith.constant 0 : index
    %2 = vector.load %arg2[%c0_2, %c0_3] : memref<32x512xf32, #tpu.memory_space<vmem>>, vector<32x512xf32>
    %cst_4 = arith.constant dense<0.000000e+00> : vector<2x512xf32>
    %3 = tpu.matmul %1, %2, %cst_4 {dimension_numbers = #tpu.dot_dimension_numbers<[1], [0], [0], [1], [0, 0, 1, 1], [], []>} : vector<2x32xf32>, vector<32x512xf32>, vector<2x512xf32> -> vector<2x512xf32>
    %c0_5 = arith.constant 0 : index
    %c0_6 = arith.constant 0 : index
    %4 = vector.load %arg6[%c0_5, %c0_6] : memref<1x1024xf32, #tpu.memory_space<vmem>>, vector<1x512xf32>
    %5 = vector.broadcast %4 : vector<1x512xf32> to vector<2x512xf32>
    %6 = arith.addf %3, %5 : vector<2x512xf32>
    %cst_7 = arith.constant 0.000000e+00 : f32
    %7 = vector.broadcast %cst_7 : f32 to vector<2x512xf32>
    %8 = arith.maximumf %6, %7 : vector<2x512xf32>
    %c0_8 = arith.constant 0 : index
    %c0_9 = arith.constant 0 : index
    %9 = vector.load %arg3[%c0_8, %c0_9] : memref<512x256xf32, #tpu.memory_space<vmem>>, vector<512x256xf32>
    %cst_10 = arith.constant dense<0.000000e+00> : vector<2x256xf32>
    %10 = tpu.matmul %8, %9, %cst_10 {dimension_numbers = #tpu.dot_dimension_numbers<[1], [0], [0], [1], [0, 0, 1, 1], [], []>} : vector<2x512xf32>, vector<512x256xf32>, vector<2x256xf32> -> vector<2x256xf32>
    %c0_11 = arith.constant 0 : index
    %c512 = arith.constant 512 : index
    %11 = vector.load %arg6[%c0_11, %c512] : memref<1x1024xf32, #tpu.memory_space<vmem>>, vector<1x256xf32>
    %12 = vector.broadcast %11 : vector<1x256xf32> to vector<2x256xf32>
    %13 = arith.addf %10, %12 : vector<2x256xf32>
    %cst_12 = arith.constant 0.000000e+00 : f32
    %14 = vector.broadcast %cst_12 : f32 to vector<2x256xf32>
    %15 = arith.maximumf %13, %14 : vector<2x256xf32>
    %c0_13 = arith.constant 0 : index
    %c0_14 = arith.constant 0 : index
    %16 = vector.load %arg4[%c0_13, %c0_14] : memref<256x128xf32, #tpu.memory_space<vmem>>, vector<256x128xf32>
    %cst_15 = arith.constant dense<0.000000e+00> : vector<2x128xf32>
    %17 = tpu.matmul %15, %16, %cst_15 {dimension_numbers = #tpu.dot_dimension_numbers<[1], [0], [0], [1], [0, 0, 1, 1], [], []>} : vector<2x256xf32>, vector<256x128xf32>, vector<2x128xf32> -> vector<2x128xf32>
    %c0_16 = arith.constant 0 : index
    %c768 = arith.constant 768 : index
    %18 = vector.load %arg6[%c0_16, %c768] : memref<1x1024xf32, #tpu.memory_space<vmem>>, vector<1x128xf32>
    %19 = vector.broadcast %18 : vector<1x128xf32> to vector<2x128xf32>
    %20 = arith.addf %17, %19 : vector<2x128xf32>
    %cst_17 = arith.constant 0.000000e+00 : f32
    %21 = vector.broadcast %cst_17 : f32 to vector<2x128xf32>
    %22 = arith.maximumf %20, %21 : vector<2x128xf32>
    %c0_18 = arith.constant 0 : index
    %c0_19 = arith.constant 0 : index
    %23 = vector.load %arg5[%c0_18, %c0_19] : memref<1x128xf32, #tpu.memory_space<vmem>>, vector<1x128xf32>
    %24 = vector.broadcast %23 : vector<1x128xf32> to vector<2x128xf32>
    %25 = arith.mulf %22, %24 : vector<2x128xf32>
    %cst_20 = arith.constant dense<0.000000e+00> : vector<2xf32>
    %26 = vector.multi_reduction <add>, %25, %cst_20 [1] : vector<2x128xf32> to vector<2xf32>
    %27 = vector.shape_cast %26 : vector<2xf32> to vector<2x1xf32>
    %c0_21 = arith.constant 0 : index
    %c896 = arith.constant 896 : index
    %28 = vector.load %arg6[%c0_21, %c896] : memref<1x1024xf32, #tpu.memory_space<vmem>>, vector<1x1xf32>
    %29 = vector.broadcast %28 : vector<1x1xf32> to vector<2x1xf32>
    %30 = arith.addf %27, %29 : vector<2x1xf32>
    %31 = arith.negf %30 : vector<2x1xf32>
    %32 = math.exp %31 : vector<2x1xf32>
    %cst_22 = arith.constant 1.000000e+00 : f32
    %33 = vector.broadcast %cst_22 : f32 to vector<2x1xf32>
    %34 = arith.addf %33, %32 : vector<2x1xf32>
    %35 = arith.divf %33, %34 : vector<2x1xf32>
    %c0_23 = arith.constant 0 : index
    %c0_24 = arith.constant 0 : index
    %36 = vector.load %arg7[%c0_23, %c0_24] : memref<2x1xf32, #tpu.memory_space<vmem>>, vector<2x1xf32>
    tpu.vector_store %arg7[%c0_23, %c0_24], %35 {strides = array<i32>} : memref<2x1xf32, #tpu.memory_space<vmem>>, vector<2x1xf32>,
    return
  }
  func.func @transform_0(%arg0: i32) -> (i32, i32, i32) {
    %c0_i32 = arith.constant 0 : i32
    %c0_i32_0 = arith.constant 0 : i32
    %c0_i32_1 = arith.constant 0 : i32
    return %arg0, %c0_i32, %c0_i32_0 : i32, i32, i32
  }
  func.func @transform_1(%arg0: i32) -> (i32, i32) {
    %c0_i32 = arith.constant 0 : i32
    %c0_i32_0 = arith.constant 0 : i32
    %c0_i32_1 = arith.constant 0 : i32
    return %c0_i32, %c0_i32_0 : i32, i32
  }
  func.func @transform_2(%arg0: i32) -> (i32, i32) {
    %c0_i32 = arith.constant 0 : i32
    %c0_i32_0 = arith.constant 0 : i32
    %c0_i32_1 = arith.constant 0 : i32
    return %c0_i32, %c0_i32_0 : i32, i32
  }
  func.func @transform_3(%arg0: i32) -> (i32, i32) {
    %c0_i32 = arith.constant 0 : i32
    %c0_i32_0 = arith.constant 0 : i32
    %c0_i32_1 = arith.constant 0 : i32
    return %c0_i32, %c0_i32_0 : i32, i32
  }
  func.func @transform_4(%arg0: i32) -> (i32, i32) {
    %c0_i32 = arith.constant 0 : i32
    %c0_i32_0 = arith.constant 0 : i32
    %c0_i32_1 = arith.constant 0 : i32
    return %c0_i32, %c0_i32_0 : i32, i32
  }
  func.func @transform_5(%arg0: i32) -> (i32, i32) {
    %c0_i32 = arith.constant 0 : i32
    %c0_i32_0 = arith.constant 0 : i32
    %c0_i32_1 = arith.constant 0 : i32
    return %c0_i32, %c0_i32_0 : i32, i32
  }
  func.func @transform_6(%arg0: i32) -> (i32, i32) {
    %c0_i32 = arith.constant 0 : i32
    %c0_i32_0 = arith.constant 0 : i32
    return %arg0, %c0_i32 : i32, i32
  }
}

</mosaic_0001>

<bundles_post_ra>
// kernel: fc_classifier_forward.1
= control target key start
LH: loop header
LB: loop body
LE: loop exit
PB: predicated region body
PF: predicated region fallthrough
CT: control target
= control target key end

     0   :  { %11 = vsyncpa [#allocation3], 0  ;;  %s869_s0 = inlined_call_operand.hbm [shape: f32[2,8,32], index: 0, kind: input, shape index: {}]   ;;  %s870_s1 = inlined_call_operand.hbm [shape: f32[32,512], index: 1, kind: input, shape index: {}]   ;;  %s871_s2 = inlined_call_operand.hbm [shape: f32[512,256], index: 2, kind: input, shape index: {}]   ;;  %s872_s3 = inlined_call_operand.hbm [shape: f32[256,128], index: 3, kind: input, shape index: {}]   ;;  %s873_s4 = inlined_call_operand.vmem [shape: f32[1,128], index: 4, kind: input, shape index: {}]   ;;  %s874_s5 = inlined_call_operand.hbm [shape: f32[1,1024], index: 5, kind: input, shape index: {}]   ;;  %s875_s6 = inlined_call_operand.vmem [shape: f32[2,1], index: 6, kind: output, shape index: {}]  }
   0x1   :  { %12 = vsyncpa [#allocation5], 0  ;;  %s31_s23 = sshll.u32 %s870_s1, 4  ;;  %s32_s23 = int_to_ptr.hbm [resolvable:$true] %s31_s23 }
   0x2   :  { %13 = vsyncpa [#allocation8], 0  ;;  %s796_s24 = smov [#allocation4]   ;;  %s797_s26 = smov 512  }
   0x3   :  { %s33_s25 = sshll.u32 %s796_s24, 4  ;;  %s798_s27 = smov 32   ;;  %s34_s25 = int_to_ptr.vmem [resolvable:$true] %s33_s25 }
   0x4   :  { %39 = dma.hbm_to_vmem [thread:$0]  %s32_s23, 2048, %s34_s25, [#allocation5], %s797_s26, %s797_s26, %s798_s27  }
   0x5   :  { %s57_s30 = sshll.u32 %s872_s3, 4  ;;  %s799_s7 = smov [#allocation7]   ;;  %s58_s30 = int_to_ptr.hbm [resolvable:$true] %s57_s30 }
   0x6   :  { %s59_s8 = sshll.u32 %s799_s7, 4  ;;  %s18_s11 = sshll.u32 %s869_s0, 4  ;;  %s60_s8 = int_to_ptr.vmem [resolvable:$true] %s59_s8  ;;  %s19_s11 = int_to_ptr.hbm [resolvable:$true] %s18_s11 }
   0x7   :  { %s800_s1 = smov 128   ;;  %s801_s12 = smov 8  }
   0x8   :  { %65 = dma.hbm_to_vmem [thread:$0]  %s58_s30, 4096, %s60_s8, [#allocation8], %s800_s1, %s800_s1, %s801_s12  }
   0x9   :  { %s44_s15 = sshll.u32 %s871_s2, 4  ;;  %s802_s16 = smov [#allocation2]   ;;  %s45_s15 = int_to_ptr.hbm [resolvable:$true] %s44_s15 }
   0xa   :  { %s20_s17 = sshll.u32 %s802_s16, 4  ;;  %s803_s3 = smov [#allocation6]   ;;  %s21_s17 = int_to_ptr.vmem [resolvable:$true] %s20_s17 }
   0xb   :  { %26 = dma.hbm_to_vmem [thread:$0]  %s19_s11, 256, %s21_s17, [#allocation3], %s800_s1, %s800_s1, %s801_s12  }
   0xc   :  { %s46_s18 = sshll.u32 %s803_s3, 4  ;;  %s804_s19 = smov 256   ;;  %s47_s18 = int_to_ptr.vmem [resolvable:$true] %s46_s18 }
   0xd   :  { %s805_s20 = smov 16   ;;  %s73_s22 = sshll.u32 %s874_s5, 4  ;;  %s74_s22 = int_to_ptr.hbm [resolvable:$true] %s73_s22 }
   0xe   :  { %52 = dma.hbm_to_vmem [thread:$0]  %s45_s15, 16384, %s47_s18, [#allocation5], %s804_s19, %s804_s19, %s805_s20  }
   0xf   :  { %s806_s23 = smov [#allocation9]  }
  0x10   :  { %s75_s24 = sshll.u32 %s806_s23, 4  ;;  %s76_s24 = int_to_ptr.vmem [resolvable:$true] %s75_s24 }
  0x11   :  { %78 = dma.hbm_to_vmem [thread:$0]  %s74_s22, 128, %s76_s24, [#allocation8]  }
  0x12   :  { %790 = dma.done.wait [#allocation3], 256  }
  0x13   :  { %791 = vsyncadd [#allocation3], 4294967040 }
  0x14   :  { %792 = dma.done.wait [#allocation5], 18432  }
  0x15   :  { %793 = vsyncadd [#allocation5], 4294948864 }
  0x16   :  { %794 = dma.done.wait [#allocation8], 4224  }
  0x17   :  { %795 = vsyncadd [#allocation8], 4294963072  ;;  %v128_v0 = vld [vmem:[#allocation4 + $0x60] sm:$0xff]  ;;  %v129_v1 = vld [vmem:[#allocation4 + $0x68] sm:$0xff]  ;;  %vm101_vm0 = vcmask 261120   ;;  %vm144_vm1 = vcmask 1041409  }
  0x18   :  { %v124_v2 = vld [vmem:[#allocation4 + $0x40] sm:$0xff]  ;;  %160 = vmatpush.msra.mxu2 %v128_v0  ;;  %180 = vmatpush.msra.mxu3 %v129_v1  ;;  %v125_v3 = vld [vmem:[#allocation4 + $0x48] sm:$0xff]  ;;  %v99_v6 = vld [vmem:[#allocation2] sm:$0xff]  ;;  %vm610_vm2 = vcmask 1041408   ;;  %vm638_vm6 = vcmask 1024  }
  0x19   :  { %v120_v4 = vld [vmem:[#allocation4 + $0x20] sm:$0xff]  ;;  %v121_v5 = vld [vmem:[#allocation4 + $0x28] sm:$0xff]  ;;  %v100_v7 = vld [vmem:[#allocation2 + $0x8] sm:$0xff]  ;;  %v102_v8 = vsel %vm101_vm0, %v99_v6, 0.0 }
  0x1a   :  { %161 = vmatpush.msra.mxu2 %v124_v2  ;;  %181 = vmatpush.msra.mxu3 %v125_v3  ;;  %v116_v9 = vld [vmem:[#allocation4] sm:$0xff]  ;;  %v117_v10 = vld [vmem:[#allocation4 + $0x8] sm:$0xff]  ;;  %v103_v11 = vrot.slane %v102_v8, 4  ;;  %v109_v12 = vsel %vm101_vm0, %v100_v7, 0.0  ;;  %v130_v14 = vld [vmem:[#allocation4 + $0x70] sm:$0xff] }
  0x1b   :  { %v110_v13 = vrot.slane %v109_v12, 4  ;;  %v131_v15 = vld [vmem:[#allocation4 + $0x78] sm:$0xff]  ;;  %v262_v17 = vld [vmem:[#allocation6 + $0xf0] sm:$0xff]  ;;  %v260_v23 = vld [vmem:[#allocation6 + $0xe0] sm:$0xff] }
  0x1c   :  { %162 = vmatpush.msra.mxu2 %v120_v4  ;;  %182 = vmatpush.msra.mxu3 %v121_v5  ;;  %v104_v16 = vadd.f32 %v103_v11, %v102_v8  ;;  %v294_v18 = vld [vmem:[#allocation6 + $0x1f0] sm:$0xff]  ;;  %v127_v21 = vld [vmem:[#allocation4 + $0x58] sm:$0xff]  ;;  %v292_v24 = vld [vmem:[#allocation6 + $0x1e0] sm:$0xff] }
  0x1d   :  { %v111_v19 = vadd.f32 %v110_v13, %v109_v12  ;;  %v126_v20 = vld [vmem:[#allocation4 + $0x50] sm:$0xff]  ;;  %v123_v27 = vld [vmem:[#allocation4 + $0x38] sm:$0xff]  ;;  %366 = vmatpush.msra.mxu0 %v262_v17  ;;  %386 = vmatpush.msra.mxu1 %v294_v18  ;;  %v256_v35 = vld [vmem:[#allocation6 + $0xc0] sm:$0xff] }
  0x1e   :  { %163 = vmatpush.msra.mxu2 %v116_v9  ;;  %183 = vmatpush.msra.mxu3 %v117_v10  ;;  %v105_v22 = vrot.slane %v104_v16, 2  ;;  %v122_v26 = vld [vmem:[#allocation4 + $0x30] sm:$0xff]  ;;  %v119_v33 = vld [vmem:[#allocation4 + $0x18] sm:$0xff]  ;;  %v288_v36 = vld [vmem:[#allocation6 + $0x1c0] sm:$0xff] }
  0x1f   :  { %v112_v25 = vrot.slane %v111_v19, 2  ;;  %v258_v29 = vld [vmem:[#allocation6 + $0xd0] sm:$0xff]  ;;  %367 = vmatpush.msra.mxu0 %v260_v23  ;;  %387 = vmatpush.msra.mxu1 %v292_v24  ;;  %v252_v45 = vld [vmem:[#allocation6 + $0xa0] sm:$0xff] }
  0x20   :  { %200 = vmatpush.msrb.mxu2 %v130_v14  ;;  %220 = vmatpush.msrb.mxu3 %v131_v15  ;;  %v106_v28 = vadd.f32 %v105_v22, %v104_v16  ;;  %v290_v30 = vld [vmem:[#allocation6 + $0x1d0] sm:$0xff]  ;;  %v284_v46 = vld [vmem:[#allocation6 + $0x1a0] sm:$0xff] }
  0x21   :  { %v113_v31 = vadd.f32 %v112_v25, %v111_v19  ;;  %v118_v32 = vld [vmem:[#allocation4 + $0x10] sm:$0xff]  ;;  %368 = vmatpush.msra.mxu0 %v258_v29  ;;  %388 = vmatpush.msra.mxu1 %v290_v30  ;;  %v324_v47 = vld [vmem:[#allocation6 + $0x2e0] sm:$0xff]  ;;  %v263_v25 = vld [vmem:[#allocation6 + $0xf8] sm:$0xff] }
  0x22   :  { %201 = vmatpush.msrb.mxu2 %v126_v20  ;;  %221 = vmatpush.msrb.mxu3 %v127_v21  ;;  %v107_v34 = vrot.slane %v106_v28, 1  ;;  %v254_v39 = vld [vmem:[#allocation6 + $0xb0] sm:$0xff]  ;;  %v356_v48 = vld [vmem:[#allocation6 + $0x3e0] sm:$0xff]  ;;  %v261_v29 = vld [vmem:[#allocation6 + $0xe8] sm:$0xff] }
  0x23   :  { %v114_v37 = vrot.slane %v113_v31, 1  ;;  %v286_v40 = vld [vmem:[#allocation6 + $0x1b0] sm:$0xff]  ;;  %369 = vmatpush.msra.mxu0 %v256_v35  ;;  %389 = vmatpush.msra.mxu1 %v288_v36  ;;  %v248_v53 = vld [vmem:[#allocation6 + $0x80] sm:$0xff]  ;;  %v293_v30 = vld [vmem:[#allocation6 + $0x1e8] sm:$0xff] }
  0x24   :  { %202 = vmatpush.msrb.mxu2 %v122_v26  ;;  %222 = vmatpush.msrb.mxu3 %v123_v27  ;;  %v108_v38 = vadd.f32 %v107_v34, %v106_v28  ;;  %v326_v42 = vld [vmem:[#allocation6 + $0x2f0] sm:$0xff]  ;;  %v280_v54 = vld [vmem:[#allocation6 + $0x180] sm:$0xff]  ;;  %v295_v26 = vld [vmem:[#allocation6 + $0x1f8] sm:$0xff] }
  0x25   :  { %v115_v41 = vadd.f32 %v114_v37, %v113_v31  ;;  %v358_v43 = vld [vmem:[#allocation6 + $0x3f0] sm:$0xff]  ;;  %370 = vmatpush.msra.mxu0 %v254_v39  ;;  %390 = vmatpush.msra.mxu1 %v286_v40  ;;  %v320_v55 = vld [vmem:[#allocation6 + $0x2c0] sm:$0xff]  ;;  %v291_v34 = vld [vmem:[#allocation6 + $0x1d8] sm:$0xff] }
  0x26   :  { %203 = vmatpush.msrb.mxu2 %v118_v32  ;;  %223 = vmatpush.msrb.mxu3 %v119_v33  ;;  %v250_v49 = vld [vmem:[#allocation6 + $0x90] sm:$0xff]  ;;  %v352_v56 = vld [vmem:[#allocation6 + $0x3c0] sm:$0xff]  ;;  %v259_v33 = vld [vmem:[#allocation6 + $0xd8] sm:$0xff] }
  0x27   :  { %v145_v44 = vsel %vm144_vm1, %v115_v41, %v108_v38  ;;  %v282_v50 = vld [vmem:[#allocation6 + $0x190] sm:$0xff]  ;;  %371 = vmatpush.msra.mxu0 %v252_v45  ;;  %391 = vmatpush.msra.mxu1 %v284_v46  ;;  %v244_v61 = vld [vmem:[#allocation6 + $0x60] sm:$0xff]  ;;  %v257_v37 = vld [vmem:[#allocation6 + $0xc8] sm:$0xff] }
  0x28   :  { %647 = vmatmul.msk.f32.vlgmr.msra.gmra.mxu2 %vm101_vm0, %v145_v44  ;;  %648 = vmatmul.msk.f32.vlgmr.msra.gmra.mxu3 %vm101_vm0, %v145_v44  ;;  %v322_v51 = vld [vmem:[#allocation6 + $0x2d0] sm:$0xff]  ;;  %v276_v62 = vld [vmem:[#allocation6 + $0x160] sm:$0xff]  ;;  %v289_v38 = vld [vmem:[#allocation6 + $0x1c8] sm:$0xff] }
  0x29   :  { %406 = vmatpush.msra.mxu2 %v326_v42  ;;  %426 = vmatpush.msra.mxu3 %v358_v43  ;;  %v354_v52 = vld [vmem:[#allocation6 + $0x3d0] sm:$0xff]  ;;  %v316_v63 = vld [vmem:[#allocation6 + $0x2a0] sm:$0xff]  ;;  %v255_v41 = vld [vmem:[#allocation6 + $0xb8] sm:$0xff] }
  0x2a   :  { %372 = vmatpush.msra.mxu0 %v250_v49  ;;  %392 = vmatpush.msra.mxu1 %v282_v50  ;;  %v246_v57 = vld [vmem:[#allocation6 + $0x70] sm:$0xff]  ;;  %v348_v0 = vld [vmem:[#allocation6 + $0x3a0] sm:$0xff]  ;;  %v287_v42 = vld [vmem:[#allocation6 + $0x1b8] sm:$0xff] }
  0x2b   :  { %407 = vmatpush.msra.mxu2 %v324_v47  ;;  %427 = vmatpush.msra.mxu3 %v356_v48  ;;  %v278_v58 = vld [vmem:[#allocation6 + $0x170] sm:$0xff]  ;;  %v240_v5 = vld [vmem:[#allocation6 + $0x40] sm:$0xff]  ;;  %v327_v43 = vld [vmem:[#allocation6 + $0x2f8] sm:$0xff] }
  0x2c   :  { %373 = vmatpush.msra.mxu0 %v248_v53  ;;  %393 = vmatpush.msra.mxu1 %v280_v54  ;;  %v318_v59 = vld [vmem:[#allocation6 + $0x2b0] sm:$0xff]  ;;  %v272_v6 = vld [vmem:[#allocation6 + $0x140] sm:$0xff]  ;;  %v253_v45 = vld [vmem:[#allocation6 + $0xa8] sm:$0xff] }
  0x2d   :  { %408 = vmatpush.msra.mxu2 %v322_v51  ;;  %428 = vmatpush.msra.mxu3 %v354_v52  ;;  %v350_v60 = vld [vmem:[#allocation6 + $0x3b0] sm:$0xff]  ;;  %v312_v7 = vld [vmem:[#allocation6 + $0x280] sm:$0xff]  ;;  %v285_v46 = vld [vmem:[#allocation6 + $0x1a8] sm:$0xff] }
  0x2e   :  { %374 = vmatpush.msra.mxu0 %v246_v57  ;;  %394 = vmatpush.msra.mxu1 %v278_v58  ;;  %v242_v1 = vld [vmem:[#allocation6 + $0x50] sm:$0xff]  ;;  %v344_v8 = vld [vmem:[#allocation6 + $0x380] sm:$0xff]  ;;  %v325_v47 = vld [vmem:[#allocation6 + $0x2e8] sm:$0xff] }
  0x2f   :  { %409 = vmatpush.msra.mxu2 %v320_v55  ;;  %429 = vmatpush.msra.mxu3 %v352_v56  ;;  %v274_v2 = vld [vmem:[#allocation6 + $0x150] sm:$0xff]  ;;  %v236_v13 = vld [vmem:[#allocation6 + $0x20] sm:$0xff]  ;;  %v357_v48 = vld [vmem:[#allocation6 + $0x3e8] sm:$0xff] }
  0x30   :  { %649 = vmatmul.msk.f32.vlgmr.msrb.gmra.mxu2 %vm101_vm0, %v145_v44  ;;  %650 = vmatmul.msk.f32.vlgmr.msrb.gmra.mxu3 %vm101_vm0, %v145_v44  ;;  %v314_v3 = vld [vmem:[#allocation6 + $0x290] sm:$0xff]  ;;  %v268_v14 = vld [vmem:[#allocation6 + $0x120] sm:$0xff]  ;;  %v359_v44 = vld [vmem:[#allocation6 + $0x3f8] sm:$0xff] }
  0x31   :  { %410 = vmatpush.msra.mxu2 %v318_v59  ;;  %430 = vmatpush.msra.mxu3 %v350_v60  ;;  %v346_v4 = vld [vmem:[#allocation6 + $0x390] sm:$0xff]  ;;  %v308_v15 = vld [vmem:[#allocation6 + $0x260] sm:$0xff]  ;;  %v251_v49 = vld [vmem:[#allocation6 + $0x98] sm:$0xff] }
  0x32   :  { %375 = vmatpush.msra.mxu0 %v244_v61  ;;  %395 = vmatpush.msra.mxu1 %v276_v62  ;;  %v238_v9 = vld [vmem:[#allocation6 + $0x30] sm:$0xff]  ;;  %v340_v16 = vld [vmem:[#allocation6 + $0x360] sm:$0xff]  ;;  %v283_v50 = vld [vmem:[#allocation6 + $0x198] sm:$0xff] }
  0x33   :  { %411 = vmatpush.msra.mxu2 %v316_v63  ;;  %431 = vmatpush.msra.mxu3 %v348_v0  ;;  %v270_v10 = vld [vmem:[#allocation6 + $0x130] sm:$0xff]  ;;  %v232_v21 = vld [vmem:[#allocation6] sm:$0xff]  ;;  %v323_v51 = vld [vmem:[#allocation6 + $0x2d8] sm:$0xff] }
  0x34   :  { %376 = vmatpush.msra.mxu0 %v242_v1  ;;  %396 = vmatpush.msra.mxu1 %v274_v2  ;;  %v310_v11 = vld [vmem:[#allocation6 + $0x270] sm:$0xff]  ;;  %v264_v22 = vld [vmem:[#allocation6 + $0x100] sm:$0xff]  ;;  %v355_v52 = vld [vmem:[#allocation6 + $0x3d8] sm:$0xff] }
  0x35   :  { %412 = vmatpush.msra.mxu2 %v314_v3  ;;  %432 = vmatpush.msra.mxu3 %v346_v4  ;;  %v342_v12 = vld [vmem:[#allocation6 + $0x370] sm:$0xff]  ;;  %v304_v23 = vld [vmem:[#allocation6 + $0x240] sm:$0xff]  ;;  %v249_v53 = vld [vmem:[#allocation6 + $0x88] sm:$0xff] }
  0x36   :  { %377 = vmatpush.msra.mxu0 %v240_v5  ;;  %397 = vmatpush.msra.mxu1 %v272_v6  ;;  %v234_v17 = vld [vmem:[#allocation6 + $0x10] sm:$0xff]  ;;  %v336_v24 = vld [vmem:[#allocation6 + $0x340] sm:$0xff]  ;;  %v281_v54 = vld [vmem:[#allocation6 + $0x188] sm:$0xff] }
  0x37   :  { %413 = vmatpush.msra.mxu2 %v312_v7  ;;  %433 = vmatpush.msra.mxu3 %v344_v8  ;;  %v266_v18 = vld [vmem:[#allocation6 + $0x110] sm:$0xff]  ;;  %v300_v31 = vld [vmem:[#allocation6 + $0x220] sm:$0xff]  ;;  %v321_v55 = vld [vmem:[#allocation6 + $0x2c8] sm:$0xff] }
  0x38   :  { %378 = vmatpush.msra.mxu0 %v238_v9  ;;  %398 = vmatpush.msra.mxu1 %v270_v10  ;;  %v306_v19 = vld [vmem:[#allocation6 + $0x250] sm:$0xff]  ;;  %v332_v32 = vld [vmem:[#allocation6 + $0x320] sm:$0xff]  ;;  %v353_v56 = vld [vmem:[#allocation6 + $0x3c8] sm:$0xff] }
  0x39   :  { %414 = vmatpush.msra.mxu2 %v310_v11  ;;  %434 = vmatpush.msra.mxu3 %v342_v12  ;;  %v338_v20 = vld [vmem:[#allocation6 + $0x350] sm:$0xff]  ;;  %v296_v39 = vld [vmem:[#allocation6 + $0x200] sm:$0xff]  ;;  %v247_v57 = vld [vmem:[#allocation6 + $0x78] sm:$0xff] }
  0x3a   :  { %379 = vmatpush.msra.mxu0 %v236_v13  ;;  %399 = vmatpush.msra.mxu1 %v268_v14  ;;  %v302_v27 = vld [vmem:[#allocation6 + $0x230] sm:$0xff]  ;;  %v328_v40 = vld [vmem:[#allocation6 + $0x300] sm:$0xff]  ;;  %v279_v58 = vld [vmem:[#allocation6 + $0x178] sm:$0xff] }
  0x3b   :  { %415 = vmatpush.msra.mxu2 %v308_v15  ;;  %435 = vmatpush.msra.mxu3 %v340_v16  ;;  %v334_v28 = vld [vmem:[#allocation6 + $0x330] sm:$0xff]  ;;  %v319_v59 = vld [vmem:[#allocation6 + $0x2b8] sm:$0xff]  ;;  %v245_v61 = vld [vmem:[#allocation6 + $0x68] sm:$0xff] }
  0x3c   :  { %380 = vmatpush.msra.mxu0 %v234_v17  ;;  %400 = vmatpush.msra.mxu1 %v266_v18  ;;  %v298_v35 = vld [vmem:[#allocation6 + $0x210] sm:$0xff]  ;;  %v351_v60 = vld [vmem:[#allocation6 + $0x3b8] sm:$0xff]  ;;  %v277_v62 = vld [vmem:[#allocation6 + $0x168] sm:$0xff] }
  0x3d   :  { %416 = vmatpush.msra.mxu2 %v306_v19  ;;  %436 = vmatpush.msra.mxu3 %v338_v20  ;;  %v330_v36 = vld [vmem:[#allocation6 + $0x310] sm:$0xff]  ;;  %v317_v63 = vld [vmem:[#allocation6 + $0x2a8] sm:$0xff]  ;;  %v243_v1 = vld [vmem:[#allocation6 + $0x58] sm:$0xff] }
  0x3e   :  { %381 = vmatpush.msra.mxu0 %v232_v21  ;;  %401 = vmatpush.msra.mxu1 %v264_v22  ;;  %v349_v0 = vld [vmem:[#allocation6 + $0x3a8] sm:$0xff]  ;;  %v275_v2 = vld [vmem:[#allocation6 + $0x158] sm:$0xff] }
  0x3f   :  { %417 = vmatpush.msra.mxu2 %v304_v23  ;;  %437 = vmatpush.msra.mxu3 %v336_v24  ;;  %v315_v3 = vld [vmem:[#allocation6 + $0x298] sm:$0xff]  ;;  %v241_v5 = vld [vmem:[#allocation6 + $0x48] sm:$0xff] }
  0x40   :  { %446 = vmatpush.msrb.mxu0 %v263_v25  ;;  %466 = vmatpush.msrb.mxu1 %v295_v26  ;;  %v347_v4 = vld [vmem:[#allocation6 + $0x398] sm:$0xff]  ;;  %v273_v6 = vld [vmem:[#allocation6 + $0x148] sm:$0xff] }
  0x41   :  { %418 = vmatpush.msra.mxu2 %v302_v27  ;;  %438 = vmatpush.msra.mxu3 %v334_v28  ;;  %v313_v7 = vld [vmem:[#allocation6 + $0x288] sm:$0xff]  ;;  %v239_v9 = vld [vmem:[#allocation6 + $0x38] sm:$0xff] }
  0x42   :  { %447 = vmatpush.msrb.mxu0 %v261_v29  ;;  %467 = vmatpush.msrb.mxu1 %v293_v30  ;;  %v345_v8 = vld [vmem:[#allocation6 + $0x388] sm:$0xff]  ;;  %v271_v10 = vld [vmem:[#allocation6 + $0x138] sm:$0xff] }
  0x43   :  { %419 = vmatpush.msra.mxu2 %v300_v31  ;;  %439 = vmatpush.msra.mxu3 %v332_v32  ;;  %v311_v11 = vld [vmem:[#allocation6 + $0x278] sm:$0xff]  ;;  %v237_v13 = vld [vmem:[#allocation6 + $0x28] sm:$0xff] }
  0x44   :  { %448 = vmatpush.msrb.mxu0 %v259_v33  ;;  %468 = vmatpush.msrb.mxu1 %v291_v34  ;;  %v343_v12 = vld [vmem:[#allocation6 + $0x378] sm:$0xff]  ;;  %v269_v14 = vld [vmem:[#allocation6 + $0x128] sm:$0xff]  ;;  %v132_v33 = vld [vmem:[#allocation9] sm:$0xf] }
  0x45   :  { %420 = vmatpush.msra.mxu2 %v298_v35  ;;  %440 = vmatpush.msra.mxu3 %v330_v36  ;;  %v309_v15 = vld [vmem:[#allocation6 + $0x268] sm:$0xff]  ;;  %v235_v17 = vld [vmem:[#allocation6 + $0x18] sm:$0xff]  ;;  %v134_v34 = vperm.slane %v132_v33, 0  ;;  %v135_v35 = vperm.slane %v132_v33, 1 }
  0x46   :  { %449 = vmatpush.msrb.mxu0 %v257_v37  ;;  %469 = vmatpush.msrb.mxu1 %v289_v38  ;;  %v341_v16 = vld [vmem:[#allocation6 + $0x368] sm:$0xff]  ;;  %v267_v18 = vld [vmem:[#allocation6 + $0x118] sm:$0xff] }
  0x47   :  { %421 = vmatpush.msra.mxu2 %v296_v39  ;;  %441 = vmatpush.msra.mxu3 %v328_v40  ;;  %v307_v19 = vld [vmem:[#allocation6 + $0x258] sm:$0xff]  ;;  %v233_v21 = vld [vmem:[#allocation6 + $0x8] sm:$0xff] }
  0x48   :  { %450 = vmatpush.msrb.mxu0 %v255_v41  ;;  %470 = vmatpush.msrb.mxu1 %v287_v42  ;;  %v339_v20 = vld [vmem:[#allocation6 + $0x358] sm:$0xff]  ;;  %v265_v22 = vld [vmem:[#allocation6 + $0x108] sm:$0xff] }
  0x49   :  { %486 = vmatpush.msrb.mxu2 %v327_v43  ;;  %506 = vmatpush.msrb.mxu3 %v359_v44  ;;  %v305_v23 = vld [vmem:[#allocation6 + $0x248] sm:$0xff]  ;;  %v303_v25 = vld [vmem:[#allocation6 + $0x238] sm:$0xff]  ;;  %v136_v44 = vperm.slane %v132_v33, 2 }
  0x4a   :  { %451 = vmatpush.msrb.mxu0 %v253_v45  ;;  %471 = vmatpush.msrb.mxu1 %v285_v46  ;;  %v337_v24 = vld [vmem:[#allocation6 + $0x348] sm:$0xff]  ;;  %v335_v26 = vld [vmem:[#allocation6 + $0x338] sm:$0xff]  ;;  %v137_v45 = vperm.slane %v132_v33, 3  ;;  %v542_v46 = vld [vmem:[#allocation7 + $0x70] sm:$0xff] }
  0x4b   :  { %487 = vmatpush.msrb.mxu2 %v325_v47  ;;  %507 = vmatpush.msrb.mxu3 %v357_v48  ;;  %v301_v27 = vld [vmem:[#allocation6 + $0x228] sm:$0xff]  ;;  %v299_v29 = vld [vmem:[#allocation6 + $0x218] sm:$0xff] }
  0x4c   :  { %452 = vmatpush.msrb.mxu0 %v251_v49  ;;  %472 = vmatpush.msrb.mxu1 %v283_v50  ;;  %v333_v28 = vld [vmem:[#allocation6 + $0x328] sm:$0xff]  ;;  %v331_v30 = vld [vmem:[#allocation6 + $0x318] sm:$0xff] }
  0x4d   :  { %488 = vmatpush.msrb.mxu2 %v323_v51  ;;  %508 = vmatpush.msrb.mxu3 %v355_v52  ;;  %v297_v31 = vld [vmem:[#allocation6 + $0x208] sm:$0xff]  ;;  %v543_v42 = vld [vmem:[#allocation7 + $0x78] sm:$0xff]  ;;  %v540_v52 = vld [vmem:[#allocation7 + $0x60] sm:$0xff] }
  0x4e   :  { %453 = vmatpush.msrb.mxu0 %v249_v53  ;;  %473 = vmatpush.msrb.mxu1 %v281_v54  ;;  %v329_v32 = vld [vmem:[#allocation6 + $0x308] sm:$0xff]  ;;  %v559_v43 = vld [vmem:[#allocation7 + $0xf8] sm:$0xff] }
  0x4f   :  { %489 = vmatpush.msrb.mxu2 %v321_v55  ;;  %509 = vmatpush.msrb.mxu3 %v353_v56  ;;  %v541_v47 = vld [vmem:[#allocation7 + $0x68] sm:$0xff]  ;;  %v539_v55 = vld [vmem:[#allocation7 + $0x58] sm:$0xff]  ;;  %v538_v56 = vld [vmem:[#allocation7 + $0x50] sm:$0xff] }
  0x50   :  { %454 = vmatpush.msrb.mxu0 %v247_v57  ;;  %474 = vmatpush.msrb.mxu1 %v279_v58  ;;  %v558_v57 = vld [vmem:[#allocation7 + $0xf0] sm:$0xff]  ;;  %v537_v58 = vld [vmem:[#allocation7 + $0x48] sm:$0xff] }
  0x51   :  { %490 = vmatpush.msrb.mxu2 %v319_v59  ;;  %510 = vmatpush.msrb.mxu3 %v351_v60  ;;  %v557_v59 = vld [vmem:[#allocation7 + $0xe8] sm:$0xff]  ;;  %v536_v60 = vld [vmem:[#allocation7 + $0x40] sm:$0xff] }
  0x52   :  { %455 = vmatpush.msrb.mxu0 %v245_v61  ;;  %475 = vmatpush.msrb.mxu1 %v277_v62  ;;  %v556_v61 = vld [vmem:[#allocation7 + $0xe0] sm:$0xff]  ;;  %v535_v62 = vld [vmem:[#allocation7 + $0x38] sm:$0xff] }
  0x53   :  { %491 = vmatpush.msrb.mxu2 %v317_v63  ;;  %511 = vmatpush.msrb.mxu3 %v349_v0  ;;  %v555_v63 = vld [vmem:[#allocation7 + $0xd8] sm:$0xff]  ;;  %v534_v0 = vld [vmem:[#allocation7 + $0x30] sm:$0xff] }
  0x54   :  { %456 = vmatpush.msrb.mxu0 %v243_v1  ;;  %476 = vmatpush.msrb.mxu1 %v275_v2  ;;  %v554_v1 = vld [vmem:[#allocation7 + $0xd0] sm:$0xff]  ;;  %v533_v2 = vld [vmem:[#allocation7 + $0x28] sm:$0xff] }
  0x55   :  { %492 = vmatpush.msrb.mxu2 %v315_v3  ;;  %512 = vmatpush.msrb.mxu3 %v347_v4  ;;  %v553_v3 = vld [vmem:[#allocation7 + $0xc8] sm:$0xff]  ;;  %v532_v4 = vld [vmem:[#allocation7 + $0x20] sm:$0xff] }
  0x56   :  { %457 = vmatpush.msrb.mxu0 %v241_v5  ;;  %477 = vmatpush.msrb.mxu1 %v273_v6  ;;  %v552_v5 = vld [vmem:[#allocation7 + $0xc0] sm:$0xff]  ;;  %v531_v6 = vld [vmem:[#allocation7 + $0x18] sm:$0xff] }
  0x57   :  { %493 = vmatpush.msrb.mxu2 %v313_v7  ;;  %513 = vmatpush.msrb.mxu3 %v345_v8  ;;  %v551_v7 = vld [vmem:[#allocation7 + $0xb8] sm:$0xff]  ;;  %v530_v8 = vld [vmem:[#allocation7 + $0x10] sm:$0xff] }
  0x58   :  { %458 = vmatpush.msrb.mxu0 %v239_v9  ;;  %478 = vmatpush.msrb.mxu1 %v271_v10  ;;  %v550_v9 = vld [vmem:[#allocation7 + $0xb0] sm:$0xff]  ;;  %v529_v10 = vld [vmem:[#allocation7 + $0x8] sm:$0xff] }
  0x59   :  { %494 = vmatpush.msrb.mxu2 %v311_v11  ;;  %514 = vmatpush.msrb.mxu3 %v343_v12  ;;  %v549_v11 = vld [vmem:[#allocation7 + $0xa8] sm:$0xff]  ;;  %v528_v12 = vld [vmem:[#allocation7] sm:$0xff] }
  0x5a   :  { %459 = vmatpush.msrb.mxu0 %v237_v13  ;;  %479 = vmatpush.msrb.mxu1 %v269_v14  ;;  %v548_v13 = vld [vmem:[#allocation7 + $0xa0] sm:$0xff]  ;;  %v547_v14 = vld [vmem:[#allocation7 + $0x98] sm:$0xff] }
  0x5b   :  { %495 = vmatpush.msrb.mxu2 %v309_v15  ;;  %515 = vmatpush.msrb.mxu3 %v341_v16  ;;  %v546_v15 = vld [vmem:[#allocation7 + $0x90] sm:$0xff]  ;;  %v545_v16 = vld [vmem:[#allocation7 + $0x88] sm:$0xff] }
  0x5c   :  { %460 = vmatpush.msrb.mxu0 %v235_v17  ;;  %480 = vmatpush.msrb.mxu1 %v267_v18  ;;  %v544_v17 = vld [vmem:[#allocation7 + $0x80] sm:$0xff] }
  0x5d   :  { %496 = vmatpush.msrb.mxu2 %v307_v19  ;;  %516 = vmatpush.msrb.mxu3 %v339_v20  ;;  %v360_v18 = vld [vmem:[#allocation9 + $0x4] sm:$0x3] }
  0x5e   :  { %461 = vmatpush.msrb.mxu0 %v233_v21  ;;  %481 = vmatpush.msrb.mxu1 %v265_v22  ;;  %v362_v20 = vperm.slane %v360_v18, 0 }
  0x5f   :  { %497 = vmatpush.msrb.mxu2 %v305_v23  ;;  %517 = vmatpush.msrb.mxu3 %v337_v24  ;;  %v363_v24 = vperm.slane %v360_v18, 1 }
  0x61   :  { %498 = vmatpush.msrb.mxu2 %v303_v25  ;;  %518 = vmatpush.msrb.mxu3 %v335_v26 }
  0x63   :  { %499 = vmatpush.msrb.mxu2 %v301_v27  ;;  %519 = vmatpush.msrb.mxu3 %v333_v28 }
  0x65   :  { %500 = vmatpush.msrb.mxu2 %v299_v29  ;;  %520 = vmatpush.msrb.mxu3 %v331_v30 }
  0x67   :  { %501 = vmatpush.msrb.mxu2 %v297_v31  ;;  %521 = vmatpush.msrb.mxu3 %v329_v32 }
  0xab   :  { %v165_v36 = vpop.f32.mrf.mxu2  ;;  %v185_v37 = vpop.f32.mrf.mxu3 }
  0xac   :  { %v166_v38 = vadd.f32 %v165_v36, %v134_v34  ;;  %v186_v39 = vadd.f32 %v185_v37, %v135_v35 }
  0xae   :  { %v228_v40 = vmax.f32 %v166_v38, 0.0  ;;  %v229_v41 = vmax.f32 %v186_v39, 0.0  ;;  %v663_v39 = vld [vmem:[#allocation9 + $0x6] ss:$0 sm:$0xff] }
  0xb0   :  { %382 = vmatmul.f32.vlgmr.msra.gmra.mxu0 %v228_v40  ;;  %402 = vmatmul.f32.vlgmr.msra.gmra.mxu1 %v229_v41 }
  0xb1   :  { %564 = vmatpush.msra.mxu0 %v543_v42  ;;  %584 = vmatpush.msra.mxu1 %v559_v43 }
  0xb3   :  { %v205_v48 = vpop.f32.mrf.mxu2  ;;  %v225_v49 = vpop.f32.mrf.mxu3  ;;  %565 = vmatpush.msra.mxu0 %v542_v46  ;;  %585 = vmatpush.msra.mxu1 %v558_v57 }
  0xb4   :  { %v206_v50 = vadd.f32 %v205_v48, %v136_v44  ;;  %v226_v51 = vadd.f32 %v225_v49, %v137_v45  ;;  %v664_v44 = vld [vmem:[%s873_s4] ss:$0 sm:$0xff]  ;;  %v665_v48 = vld [vmem:[#allocation9 + $0x7] ss:$0 sm:$0xff] }
  0xb5   :  { %566 = vmatpush.msra.mxu0 %v541_v47  ;;  %586 = vmatpush.msra.mxu1 %v557_v59 }
  0xb6   :  { %v230_v53 = vmax.f32 %v206_v50, 0.0  ;;  %v231_v54 = vmax.f32 %v226_v51, 0.0 }
  0xb7   :  { %567 = vmatpush.msra.mxu0 %v540_v52  ;;  %587 = vmatpush.msra.mxu1 %v556_v61 }
  0xb8   :  { %422 = vmatmul.f32.vlgmr.msra.gmra.mxu2 %v230_v53  ;;  %442 = vmatmul.f32.vlgmr.msra.gmra.mxu3 %v231_v54 }
  0xb9   :  { %462 = vmatmul.f32.vlgmr.msrb.gmra.mxu0 %v228_v40  ;;  %482 = vmatmul.f32.vlgmr.msrb.gmra.mxu1 %v229_v41 }
  0xba   :  { %568 = vmatpush.msra.mxu0 %v539_v55  ;;  %588 = vmatpush.msra.mxu1 %v555_v63 }
  0xbc   :  { %569 = vmatpush.msra.mxu0 %v538_v56  ;;  %589 = vmatpush.msra.mxu1 %v554_v1 }
  0xbe   :  { %570 = vmatpush.msra.mxu0 %v537_v58  ;;  %590 = vmatpush.msra.mxu1 %v553_v3 }
  0xc0   :  { %502 = vmatmul.f32.vlgmr.msrb.gmra.mxu2 %v230_v53  ;;  %522 = vmatmul.f32.vlgmr.msrb.gmra.mxu3 %v231_v54 }
  0xc1   :  { %571 = vmatpush.msra.mxu0 %v536_v60  ;;  %591 = vmatpush.msra.mxu1 %v552_v5 }
  0xc3   :  { %572 = vmatpush.msra.mxu0 %v535_v62  ;;  %592 = vmatpush.msra.mxu1 %v551_v7 }
  0xc5   :  { %573 = vmatpush.msra.mxu0 %v534_v0  ;;  %593 = vmatpush.msra.mxu1 %v550_v9 }
  0xc7   :  { %574 = vmatpush.msra.mxu0 %v533_v2  ;;  %594 = vmatpush.msra.mxu1 %v549_v11 }
  0xc9   :  { %575 = vmatpush.msra.mxu0 %v532_v4  ;;  %595 = vmatpush.msra.mxu1 %v548_v13 }
  0xcb   :  { %576 = vmatpush.msra.mxu0 %v531_v6  ;;  %596 = vmatpush.msra.mxu1 %v547_v14 }
  0xcd   :  { %577 = vmatpush.msra.mxu0 %v530_v8  ;;  %597 = vmatpush.msra.mxu1 %v546_v15 }
  0xcf   :  { %578 = vmatpush.msra.mxu0 %v529_v10  ;;  %598 = vmatpush.msra.mxu1 %v545_v16 }
  0xd1   :  { %579 = vmatpush.msra.mxu0 %v528_v12  ;;  %599 = vmatpush.msra.mxu1 %v544_v17 }
 0x12d   :  { %v383_v19 = vpop.f32.mrf.mxu0  ;;  %v403_v22 = vpop.f32.mrf.mxu1 }
 0x12e   :  { %v384_v21 = vadd.f32 %v383_v19, %v362_v20 }
 0x130   :  { %v404_v23 = vadd.f32 %v403_v22, %v384_v21 }
 0x136   :  { %v463_v25 = vpop.f32.mrf.mxu0  ;;  %v483_v32 = vpop.f32.mrf.mxu1 }
 0x137   :  { %v464_v29 = vadd.f32 %v463_v25, %v363_v24 }
 0x139   :  { %v484_v33 = vadd.f32 %v483_v32, %v464_v29 }
 0x13b   :  { %v423_v26 = vpop.f32.mrf.mxu2  ;;  %v443_v27 = vpop.f32.mrf.mxu3 }
 0x13c   :  { %v424_v28 = vadd.f32 %v423_v26, %v404_v23 }
 0x13e   :  { %v444_v30 = vadd.f32 %v443_v27, %v424_v28 }
 0x140   :  { %v526_v31 = vmax.f32 %v444_v30, 0.0 }
 0x142   :  { %580 = vmatmul.f32.vlgmr.msra.gmra.mxu0 %v526_v31 }
 0x143   :  { %v503_v34 = vpop.f32.mrf.mxu2  ;;  %v523_v36 = vpop.f32.mrf.mxu3 }
 0x144   :  { %v504_v35 = vadd.f32 %v503_v34, %v484_v33 }
 0x146   :  { %v524_v37 = vadd.f32 %v523_v36, %v504_v35 }
 0x148   :  { %v527_v38 = vmax.f32 %v524_v37, 0.0 }
 0x14a   :  { %600 = vmatmul.f32.vlgmr.msra.gmra.mxu1 %v527_v38 }
 0x1bf   :  { %v581_v40 = vpop.f32.mrf.mxu0 }
 0x1c0   :  { %v582_v41 = vadd.f32 %v663_v39, %v581_v40 }
 0x1c7   :  { %v601_v42 = vpop.f32.mrf.mxu1 }
 0x1c8   :  { %v602_v43 = vadd.f32 %v601_v42, %v582_v41 }
 0x1ca   :  { %v604_v45 = vmax.f32 %v602_v43, 0.0 }
 0x1cc   :  { %v609_v46 = vmul.f32 %v664_v44, %v604_v45 }
 0x1ce   :  { %v611_v47 = vsel %vm610_vm2, %v609_v46, 0.0 }
 0x1cf   :  { %612 = vadd.xlane.f32.xlu0 %v611_v47 }
 0x242   :  { %v613_v49 = vpop.xlane.xlu0 %612 }
 0x243   :  { %v618_v50 = vadd.f32 %v665_v48, %v613_v49 }
 0x245   :  { %v651_v51 = vmul.f32 -1.442695, %v618_v50 }
 0x247   :  { %666 = vpow2.f32 %v651_v51 }
 0x24d   :  { %v667_v52 = vpop.eup %666 }
 0x24e   :  { %v622_v53 = vadd.f32 1.0, %v667_v52 }
 0x250   :  { %668 = vrcp.f32 %v622_v53  ;;  %v634_v57 = vand.u32 2147483648, %v622_v53  ;;  %v632_v59 = vand.u32 2147483647, %v622_v53  ;;  %vm628_vm4 = vweird.f32 %v622_v53 }
 0x252   :  { %v635_v61 = vor.u32 1.1754944e-38, %v634_v57  ;;  %vm633_vm7 = vcmp.eq.f32.partialorder %v632_v59, 8.507059e+37 }
 0x256   :  { %v669_v54 = vpop.eup %668 }
 0x257   :  { %v624_v55 = vmul.f32 %v669_v54, %v622_v53  ;;  %vm629_vm3 = vweird.f32 %v669_v54 }
 0x258   :  { %vm630_vm5 = vmor %vm628_vm4, %vm629_vm3 }
 0x259   :  { %v625_v56 = vsub.f32 1.0, %v624_v55 }
 0x25b   :  { %v626_v58 = vmul.f32 %v669_v54, %v625_v56 }
 0x25d   :  { %v627_v60 = vadd.f32 %v669_v54, %v626_v58 }
 0x25f   :  { %v631_v62 = vsel %vm630_vm5, %v669_v54, %v627_v60 }
 0x260   :  { %v636_v63 = vsel %vm633_vm7, %v635_v61, %v631_v62 }
 0x261   :  { %639 = vst.msk [vmem:[%s875_s6] sm:$0x3] %vm638_vm6, %v636_v63 }
 0x262   :  { %644 = vsyncpa [#allocation3], 1 }
 0x263   :  { %645 = vsyncpa [#allocation5], 1 }
 0x264   :  { %646 = vsyncpa [#allocation8], 1 }

</bundles_post_ra>
